<compile_context>
chip_gen: v5e
topology: v5e:2x2
jax: 0.10.0
libtpu: 0.0.40
codegen_flags: <defaults>
</compile_context>

<pallas_src>
import math
from functools import partial

import jax
import jax.numpy as jnp
import numpy as np
from jax import lax
from jax.experimental import pallas as pl
from jax.experimental.pallas import tpu as pltpu

HIDDEN = 512
LANE = 128


def _round_up(x: int, m: int) -> int:
    return (x + m - 1) // m * m


def _cpb_kernel(w_ref, o_ref, *, h: int, bc: int, hh_pad: int):
    """Whole forward in one invocation.

    w_ref: (n_heads + 2, 512) packed weights, lane-dense rows:
             row 0    = w1 (first Linear weight, in_features=1) as a row
             row 1    = b1 (first Linear bias) as a row
             rows 2.. = w2 (second Linear weight, torch (out,in) layout)
    o_ref: (n_heads, hh_pad); o[n, i*h + j] = bias of head n at (i, j);
           columns >= h*h are padding (sliced in the wrapper).
    """
    L = 2 * h - 1

    w_all = w_ref[...]                                           # one dense (nh+2, 512) load
    w1_row = w_all[0:1, :]                                       # (1, 512)
    b1_row = w_all[1:2, :]                                       # (1, 512)
    w2 = w_all[2:, :]                                            # (nh, 512)

    # ---- relative coordinates built in-kernel (sublane iota, no input DMA) ----
    k_col = lax.broadcasted_iota(jnp.int32, (L, HIDDEN), 0)      # row index, constant per row
    if bc == 0:
        rel_i = k_col - (h - 1)
    else:  # bc == 1 (even h): three concatenated aranges, expressed piecewise over k
        m = h // 2
        rel_i = jnp.where(
            k_col < m, k_col + 1,
            jnp.where(k_col < m + h, k_col - h + 1, k_col - 2 * h + 1))
    rel = rel_i.astype(jnp.float32) * (1.0 / (h - 1))            # (L, 512)

    # ---- MLP, hidden kept lane-dense: (L, 512) instead of (512, L) ----
    hidden = jnp.maximum(rel * w1_row + b1_row, 0.0)             # (L, 512)   VPU

    # table_t[n, r] = w2[n, :] . hidden[r, :]  -> A @ B^T on the MXU (splash-attn "NT" dims)
    logits = lax.dot_general(w2, hidden, (((1,), (1,)), ((), ())),
                             preferred_element_type=jnp.float32)  # (nh, L)
    table_t = 16.0 / (1.0 + jnp.exp(-logits))                     # (nh, L)   EUP sigmoid

    # ---- Toeplitz gather as a one-hot matmul with a lane-dense (L, hh_pad) one-hot ----
    k = lax.broadcasted_iota(jnp.int32, (L, hh_pad), 0)          # table row index
    p = lax.broadcasted_iota(jnp.int32, (L, hh_pad), 1)          # flat position i*h + j
    if h & (h - 1) == 0:                                         # power-of-two h: shift/mask
        shift = h.bit_length() - 1
        row = p >> shift
        col = p & (h - 1)
    else:                                                        # generic h: one div, no mod
        row = p // h
        col = p - row * h
    idx = col - row + (h - 1)                                    # in [0, 2h-2] for valid p
    onehot = (k == idx).astype(jnp.float32)                      # (L, hh_pad)

    # (nh, L) @ (L, hh_pad) -> (nh, hh_pad): lane-dense output, unmasked stores.
    o_ref[...] = jnp.dot(table_t, onehot, preferred_element_type=jnp.float32)


def continuous_position_bias_1d(params, h: int, h2=None, bc: int = 0):
    """Pallas-backed forward.  Returns (1, n_heads, h, h) float32."""
    del h2  # unused by the PyTorch forward as well
    w1, b1, w2 = params                       # torch layouts: (512,1), (512,), (nh,512)
    n_heads = w2.shape[0]
    if h < 2:
        raise ValueError("h must be >= 2")
    if bc not in (0, 1):
        raise ValueError("bc must be 0 or 1")
    if bc == 1 and h % 2 != 0:
        # Original module's bc=1 indexing is only consistent for even h.
        raise ValueError("bc=1 requires even h")

    L = 2 * h - 1
    hh = h * h
    hh_pad = _round_up(hh, LANE)

    # Pack all weights into one lane-dense (nh+2, 512) array: a single small dense DMA.
    packed = jnp.concatenate(
        [w1.reshape(1, HIDDEN).astype(jnp.float32),
         b1.reshape(1, HIDDEN).astype(jnp.float32),
         w2.astype(jnp.float32)], axis=0)                        # (nh+2, 512)

    cost = pl.CostEstimate(
        flops=2 * (n_heads * HIDDEN * L + n_heads * L * hh_pad),
        transcendentals=n_heads * L,
        bytes_accessed=packed.size * 4 + n_heads * hh_pad * 4,
    )

    biases_2d = pl.pallas_call(
        partial(_cpb_kernel, h=h, bc=bc, hh_pad=hh_pad),
        out_shape=jax.ShapeDtypeStruct((n_heads, hh_pad), jnp.float32),
        in_specs=[pl.BlockSpec(memory_space=pltpu.MemorySpace.VMEM)],
        out_specs=pl.BlockSpec(memory_space=pltpu.MemorySpace.VMEM),
        cost_estimate=cost,
    )(packed)                                                    # (nh, hh_pad)

    if hh_pad != hh:
        biases_2d = biases_2d[:, :hh]
    # Pure metadata reshape: (nh, h*h) -> (1, nh, h, h) (no transpose op).
    return biases_2d.reshape(1, n_heads, h, h)


def _reference(params, h: int, bc: int = 0):
    """Pure-JAX reference mirroring the PyTorch module exactly (torch weight layouts)."""
    w1, b1, w2 = params                                          # (512,1), (512,), (nh,512)
    if bc == 0:
        rel = jnp.arange(-(h - 1), h, dtype=jnp.float32) / (h - 1)
    else:
        rel = jnp.concatenate([
            jnp.arange(1, h // 2 + 1, dtype=jnp.float32),
            jnp.arange(-(h // 2 - 1), h // 2 + 1, dtype=jnp.float32),
            jnp.arange(-(h // 2 - 1), 0, dtype=jnp.float32),
        ]) / (h - 1)
    x = rel[:, None]                                             # (L, 1)
    hi = jax.nn.relu(
        jnp.dot(x, w1.T, precision=jax.lax.Precision.HIGHEST) + b1[None, :])   # (L, 512)
    table = 16.0 * jax.nn.sigmoid(
        jnp.dot(hi, w2.T, precision=jax.lax.Precision.HIGHEST))                # (L, nh)
    coords = jnp.arange(h)
    idx = coords[None, :] - coords[:, None] + (h - 1)            # (h, h)
    biases = table[idx]                                          # (h, h, nh)
    return jnp.transpose(biases, (2, 0, 1))[None]                # (1, nh, h, h)


def init_params(key, n_heads: int):
    """Deterministic init matching torch.nn.Linear defaults (uniform +-1/sqrt(fan_in))."""
    k1, k2, k3 = jax.random.split(key, 3)
    bound1 = 1.0 / math.sqrt(1.0)       # fan_in = 1
    bound2 = 1.0 / math.sqrt(HIDDEN)    # fan_in = 512
    w1 = jax.random.uniform(k1, (HIDDEN, 1), jnp.float32, -bound1, bound1)   # torch (out,in)
    b1 = jax.random.uniform(k2, (HIDDEN,), jnp.float32, -bound1, bound1)     # torch bias
    w2 = jax.random.uniform(k3, (n_heads, HIDDEN), jnp.float32, -bound2, bound2)
    return w1, b1, w2


if __name__ == "__main__":
    n_heads = 4
    params = init_params(jax.random.PRNGKey(0), n_heads)

    # h=16 (pow-2, hh=256 already lane-dense), bc=1 piecewise path, and h=12 (non-pow-2,
    # hh=144 -> padded to 256) to exercise every kernel branch.
    for h, bc in ((16, 0), (16, 1), (12, 0)):
        out = jax.block_until_ready(continuous_position_bias_1d(params, h, h, bc=bc))
        ref = jax.block_until_ready(_reference(params, h, bc=bc))
        assert out.shape == (1, n_heads, h, h), out.shape
        assert out.dtype == jnp.float32
        np.testing.assert_allclose(np.asarray(out), np.asarray(ref), rtol=1e-4, atol=1e-4)

    print("KERNEL_OK")
</pallas_src>

<mosaic_0001>
module attributes {stable_mosaic.version = 11 : i64} {
  func.func @_cpb_kernel(%arg0: memref<6x512xf32, #tpu.memory_space<vmem>>, %arg1: memref<4x256xf32, #tpu.memory_space<vmem>>) attributes {dimension_semantics = [], scalar_prefetch = 0 : i64, scratch_operands = 0 : i64, tpu.core_type = #tpu.core_type<tc>} {
    %c0 = arith.constant 0 : index
    %c0_0 = arith.constant 0 : index
    %0 = vector.load %arg0[%c0, %c0_0] : memref<6x512xf32, #tpu.memory_space<vmem>>, vector<6x512xf32>
    %1 = vector.extract_strided_slice %0 {offsets = [0, 0], sizes = [1, 512], strides = [1, 1]} : vector<6x512xf32> to vector<1x512xf32>
    %2 = vector.extract_strided_slice %0 {offsets = [1, 0], sizes = [1, 512], strides = [1, 1]} : vector<6x512xf32> to vector<1x512xf32>
    %3 = vector.extract_strided_slice %0 {offsets = [2, 0], sizes = [4, 512], strides = [1, 1]} : vector<6x512xf32> to vector<4x512xf32>
    %4 = tpu.iota {dimensions = array<i32: 0>} : vector<31x512xi32>
    %c15_i32 = arith.constant 15 : i32
    %5 = vector.broadcast %c15_i32 : i32 to vector<31x512xi32>
    %6 = arith.subi %4, %5 : vector<31x512xi32>
    %7 = arith.sitofp %6 : vector<31x512xi32> to vector<31x512xf32>
    %cst = arith.constant 0.0666666701 : f32
    %8 = vector.broadcast %cst : f32 to vector<31x512xf32>
    %9 = arith.mulf %7, %8 : vector<31x512xf32>
    %10 = vector.broadcast %1 : vector<1x512xf32> to vector<31x512xf32>
    %11 = arith.mulf %9, %10 : vector<31x512xf32>
    %12 = vector.broadcast %2 : vector<1x512xf32> to vector<31x512xf32>
    %13 = arith.addf %11, %12 : vector<31x512xf32>
    %cst_1 = arith.constant 0.000000e+00 : f32
    %14 = vector.broadcast %cst_1 : f32 to vector<31x512xf32>
    %15 = arith.maximumf %13, %14 : vector<31x512xf32>
    %cst_2 = arith.constant dense<0.000000e+00> : vector<4x31xf32>
    %16 = tpu.matmul %3, %15, %cst_2 {dimension_numbers = #tpu.dot_dimension_numbers<[1], [1], [0], [0], [0, 0, 1, 0], [], []>} : vector<4x512xf32>, vector<31x512xf32>, vector<4x31xf32> -> vector<4x31xf32>
    %cst_3 = arith.constant 0.000000e+00 : f32
    %17 = vector.broadcast %cst_3 : f32 to vector<4x31xf32>
    %18 = arith.subf %17, %16 : vector<4x31xf32>
    %19 = math.exp %18 : vector<4x31xf32>
    %cst_4 = arith.constant 1.000000e+00 : f32
    %20 = vector.broadcast %cst_4 : f32 to vector<4x31xf32>
    %21 = arith.addf %20, %19 : vector<4x31xf32>
    %cst_5 = arith.constant 1.600000e+01 : f32
    %22 = vector.broadcast %cst_5 : f32 to vector<4x31xf32>
    %23 = arith.divf %22, %21 : vector<4x31xf32>
    %24 = tpu.iota {dimensions = array<i32: 0>} : vector<31x256xi32>
    %25 = tpu.iota {dimensions = array<i32: 1>} : vector<31x256xi32>
    %c4_i32 = arith.constant 4 : i32
    %26 = vector.broadcast %c4_i32 : i32 to vector<31x256xi32>
    %27 = arith.shrsi %25, %26 : vector<31x256xi32>
    %c15_i32_6 = arith.constant 15 : i32
    %28 = vector.broadcast %c15_i32_6 : i32 to vector<31x256xi32>
    %29 = arith.andi %25, %28 : vector<31x256xi32>
    %30 = arith.subi %29, %27 : vector<31x256xi32>
    %c15_i32_7 = arith.constant 15 : i32
    %31 = vector.broadcast %c15_i32_7 : i32 to vector<31x256xi32>
    %32 = arith.addi %30, %31 : vector<31x256xi32>
    %33 = arith.cmpi eq, %24, %32 : vector<31x256xi32>
    %34 = arith.extui %33 : vector<31x256xi1> to vector<31x256xi32>
    %35 = arith.sitofp %34 : vector<31x256xi32> to vector<31x256xf32>
    %cst_8 = arith.constant dense<0.000000e+00> : vector<4x256xf32>
    %36 = tpu.matmul %23, %35, %cst_8 {dimension_numbers = #tpu.dot_dimension_numbers<[1], [0], [0], [1], [0, 0, 1, 1], [], []>} : vector<4x31xf32>, vector<31x256xf32>, vector<4x256xf32> -> vector<4x256xf32>
    %c0_9 = arith.constant 0 : index
    %c0_10 = arith.constant 0 : index
    %37 = vector.load %arg1[%c0_9, %c0_10] : memref<4x256xf32, #tpu.memory_space<vmem>>, vector<4x256xf32>
    tpu.vector_store %arg1[%c0_9, %c0_10], %36 {strides = array<i32>} : memref<4x256xf32, #tpu.memory_space<vmem>>, vector<4x256xf32>,
    return
  }
}

</mosaic_0001>

<bundles_post_ra>
// kernel: tpu_custom_call.1
= control target key start
LH: loop header
LB: loop body
LE: loop exit
PB: predicated region body
PF: predicated region fallthrough
CT: control target
= control target key end

     0   :  { %6 = vsyncpa [#allocation3], 0  ;;  %s468_s0 = inlined_call_operand.hbm [shape: f32[6,512], index: 0, kind: input, shape index: {}]   ;;  %s469_s1 = inlined_call_operand.hbm [shape: f32[4,256], index: 1, kind: output, shape index: {}]  }
   0x1   :  { %7 = vsyncpa [#allocation4], 0  ;;  %s13_s8 = sshll.u32 %s468_s0, 4  ;;  %s403_s9 = smov [#allocation2]   ;;  %s14_s8 = int_to_ptr.hbm [resolvable:$true] %s13_s8 }
   0x2   :  { %s15_s10 = sshll.u32 %s403_s9, 4  ;;  %s16_s10 = int_to_ptr.vmem [resolvable:$true] %s15_s10 }
   0x3   :  { %18 = dma.hbm_to_vmem [thread:$0]  %s14_s8, 512, %s16_s10, [#allocation3]  }
   0x4   :  { %399 = dma.done.wait [#allocation3], 512  }
   0x5   :  { %400 = vsyncadd [#allocation3], 4294966784  ;;  %v27_v0 = vlaneseq  ;;  %v436_v9 = vld [vmem:[#allocation2 + $0x10] sm:$0x3f]  ;;  %v438_v10 = vld [vmem:[#allocation2 + $0x18] sm:$0x3f] }
   0x6   :  { %v440_v11 = vld [vmem:[#allocation2] sm:$0x3f]  ;;  %v46_v14 = vperm.slane %v436_v9, 0  ;;  %v66_v15 = vperm.slane %v436_v9, 1  ;;  %v47_v16 = vperm.slane %v438_v10, 0  ;;  %v67_v18 = vperm.slane %v438_v10, 1 }
   0x7   :  { %v421_v1 = vshrl.u32 %v27_v0, 7  ;;  %v445_v17 = vld [vmem:[#allocation2 + $0x8] sm:$0x3f]  ;;  %v44_v19 = vperm.slane %v440_v11, 0  ;;  %v64_v20 = vperm.slane %v440_v11, 1  ;;  %vm250_vm0 = vcmask 1046528  }
   0x8   :  { %v45_v21 = vperm.slane %v445_v17, 0  ;;  %v65_v23 = vperm.slane %v445_v17, 1  ;;  %vm246_vm13 = vcmask 252928   ;;  %s406_s0 = smov [#allocation5]   ;;  %s311_s14 = sshll.u32 %s469_s1, 4  ;;  %vm300_vm14 = vcmask 1043456   ;;  %s312_s14 = int_to_ptr.hbm [resolvable:$true] %s311_s14 }
   0x9   :  { %v424_v2 = vadd.s32 24, %v421_v1  ;;  %v427_v3 = vadd.s32 16, %v421_v1  ;;  %v430_v4 = vadd.s32 8, %v421_v1  ;;  %v321_v5 = vadd.s32 4294967281, %v421_v1  ;;  %s309_s11 = sshll.u32 %s406_s0, 4  ;;  %s310_s11 = int_to_ptr.vmem [resolvable:$true] %s309_s11 }
   0xb   :  { %v324_v6 = vadd.s32 4294967281, %v424_v2  ;;  %v323_v7 = vadd.s32 4294967281, %v427_v3  ;;  %v322_v8 = vadd.s32 4294967281, %v430_v4  ;;  %v36_v12 = vcvt.s32.f32 %v321_v5 }
   0xd   :  { %v39_v13 = vcvt.s32.f32 %v324_v6  ;;  %v38_v24 = vcvt.s32.f32 %v323_v7  ;;  %v37_v25 = vcvt.s32.f32 %v322_v8  ;;  %v40_v26 = vmul.f32 0.06666667, %v36_v12 }
   0xf   :  { %v43_v22 = vmul.f32 0.06666667, %v39_v13  ;;  %v42_v31 = vmul.f32 0.06666667, %v38_v24  ;;  %v41_v32 = vmul.f32 0.06666667, %v37_v25  ;;  %v50_v33 = vmul.f32 %v46_v14, %v40_v26 }
  0x10   :  { %v51_v34 = vmul.f32 %v47_v16, %v40_v26  ;;  %v48_v63 = vmul.f32 %v44_v19, %v40_v26  ;;  %v49_v5 = vmul.f32 %v45_v21, %v40_v26  ;;  %v107_v26 = vrot.slane %v438_v10, 2 }
  0x11   :  { %v62_v27 = vmul.f32 %v46_v14, %v43_v22  ;;  %v63_v28 = vmul.f32 %v47_v16, %v43_v22  ;;  %v60_v29 = vmul.f32 %v44_v19, %v43_v22  ;;  %v61_v30 = vmul.f32 %v45_v21, %v43_v22 }
  0x12   :  { %v58_v39 = vmul.f32 %v46_v14, %v42_v31  ;;  %v59_v40 = vmul.f32 %v47_v16, %v42_v31  ;;  %v56_v41 = vmul.f32 %v44_v19, %v42_v31  ;;  %v57_v42 = vmul.f32 %v45_v21, %v42_v31 }
  0x13   :  { %v82_v35 = vadd.f32 %v66_v15, %v62_v27  ;;  %v83_v36 = vadd.f32 %v67_v18, %v63_v28  ;;  %v80_v37 = vadd.f32 %v64_v20, %v60_v29  ;;  %v81_v38 = vadd.f32 %v65_v23, %v61_v30 }
  0x14   :  { %v78_v47 = vadd.f32 %v66_v15, %v58_v39  ;;  %v79_v48 = vadd.f32 %v67_v18, %v59_v40  ;;  %v76_v49 = vadd.f32 %v64_v20, %v56_v41  ;;  %v77_v50 = vadd.f32 %v65_v23, %v57_v42 }
  0x15   :  { %v98_v43 = vmax.f32 %v82_v35, 0.0  ;;  %v99_v44 = vmax.f32 %v83_v36, 0.0  ;;  %v96_v45 = vmax.f32 %v80_v37, 0.0  ;;  %v97_v46 = vmax.f32 %v81_v38, 0.0 }
  0x16   :  { %v54_v51 = vmul.f32 %v46_v14, %v41_v32  ;;  %v55_v52 = vmul.f32 %v47_v16, %v41_v32  ;;  %v52_v53 = vmul.f32 %v44_v19, %v41_v32  ;;  %v94_v54 = vmax.f32 %v78_v47, 0.0 }
  0x17   :  { %164 = vmatpush.xpose.msra.mxu2 %v98_v43  ;;  %184 = vmatpush.xpose.msra.mxu3 %v99_v44  ;;  %v95_v55 = vmax.f32 %v79_v48, 0.0  ;;  %v92_v56 = vmax.f32 %v76_v49, 0.0  ;;  %v93_v57 = vmax.f32 %v77_v50, 0.0  ;;  %v53_v61 = vmul.f32 %v45_v21, %v41_v32 }
  0x18   :  { %124 = vmatpush.xpose.msra.mxu0 %v96_v45  ;;  %144 = vmatpush.xpose.msra.mxu1 %v97_v46  ;;  %v74_v58 = vadd.f32 %v66_v15, %v54_v51  ;;  %v75_v59 = vadd.f32 %v67_v18, %v55_v52  ;;  %v72_v60 = vadd.f32 %v64_v20, %v52_v53  ;;  %v106_v21 = vrot.slane %v436_v9, 2 }
  0x19   :  { %v70_v62 = vadd.f32 %v66_v15, %v50_v33  ;;  %v73_v8 = vadd.f32 %v65_v23, %v53_v61  ;;  %v71_v12 = vadd.f32 %v67_v18, %v51_v34  ;;  %v68_v14 = vadd.f32 %v64_v20, %v48_v63 }
  0x1a   :  { %v90_v6 = vmax.f32 %v74_v58, 0.0  ;;  %v91_v7 = vmax.f32 %v75_v59, 0.0  ;;  %v88_v13 = vmax.f32 %v72_v60, 0.0  ;;  %v69_v16 = vadd.f32 %v65_v23, %v49_v5 }
  0x1b   :  { %165 = vmatpush.xpose.msra.mxu2 %v94_v54  ;;  %185 = vmatpush.xpose.msra.mxu3 %v95_v55  ;;  %v89_v22 = vmax.f32 %v73_v8, 0.0  ;;  %v86_v24 = vmax.f32 %v70_v62, 0.0  ;;  %v87_v25 = vmax.f32 %v71_v12, 0.0  ;;  %v84_v15 = vmax.f32 %v68_v14, 0.0 }
  0x1c   :  { %125 = vmatpush.xpose.msra.mxu0 %v92_v56  ;;  %145 = vmatpush.xpose.msra.mxu1 %v93_v57  ;;  %v85_v19 = vmax.f32 %v69_v16, 0.0  ;;  %v104_v18 = vrot.slane %v440_v11, 2  ;;  %v105_v20 = vrot.slane %v445_v17, 2  ;;  %v212_v23 = vand.u32 127, %v27_v0 }
  0x1d   :  { %v404_v35 = vmov 0.0   ;;  %v405_v39 = vmov 1.0  }
  0x1e   :  { %v213_v27 = vadd.s32 128, %v212_v23  ;;  %v214_v9 = vshra.s32 %v212_v23, 4  ;;  %v216_v30 = vand.u32 15, %v212_v23 }
  0x1f   :  { %166 = vmatpush.xpose.msra.mxu2 %v90_v6  ;;  %186 = vmatpush.xpose.msra.mxu3 %v91_v7 }
  0x20   :  { %126 = vmatpush.xpose.msra.mxu0 %v88_v13  ;;  %146 = vmatpush.xpose.msra.mxu1 %v89_v22  ;;  %v215_v28 = vshra.s32 %v213_v27, 4  ;;  %v217_v29 = vand.u32 15, %v213_v27  ;;  %v218_v31 = vsub.s32 %v216_v30, %v214_v9 }
  0x22   :  { %v219_v10 = vsub.s32 %v217_v29, %v215_v28  ;;  %v220_v33 = vadd.s32 15, %v218_v31 }
  0x23   :  { %167 = vmatpush.xpose.msra.mxu2 %v86_v24  ;;  %187 = vmatpush.xpose.msra.mxu3 %v87_v25 }
  0x24   :  { %127 = vmatpush.xpose.msra.mxu0 %v84_v15  ;;  %147 = vmatpush.xpose.msra.mxu1 %v85_v19  ;;  %v221_v32 = vadd.s32 15, %v219_v10  ;;  %vm228_vm2 = vcmp.eq.s32.totalorder %v424_v2, %v220_v33  ;;  %vm226_vm4 = vcmp.eq.s32.totalorder %v427_v3, %v220_v33  ;;  %vm224_vm6 = vcmp.eq.s32.totalorder %v430_v4, %v220_v33 }
  0x25   :  { %v331_v0 = vsel %vm228_vm2, 1.0, %v404_v35  ;;  %vm222_vm8 = vcmp.eq.s32.totalorder %v421_v1, %v220_v33 }
  0x26   :  { %168 = vmatmul.f32.vlgmr.msra.gmra.mxu2 %v106_v21  ;;  %188 = vmatmul.f32.vlgmr.msra.gmra.mxu3 %v107_v26  ;;  %vm229_vm1 = vcmp.eq.s32.totalorder %v424_v2, %v221_v32  ;;  %vm227_vm3 = vcmp.eq.s32.totalorder %v427_v3, %v221_v32  ;;  %vm225_vm5 = vcmp.eq.s32.totalorder %v430_v4, %v221_v32 }
  0x27   :  { %128 = vmatmul.f32.vlgmr.msra.gmra.mxu0 %v104_v18  ;;  %148 = vmatmul.f32.vlgmr.msra.gmra.mxu1 %v105_v20  ;;  %v332_v36 = vsel %vm229_vm1, 1.0, %v404_v35  ;;  %vm223_vm7 = vcmp.eq.s32.totalorder %v421_v1, %v221_v32 }
  0x28   :  { %338 = vmatpush.msk.msrb.mxu1 %vm250_vm0, %v332_v36  ;;  %333 = vmatpush.msk.msrb.mxu0 %vm250_vm0, %v331_v0 }
  0x2a   :  { %339 = vmatpush.msk.msrb.mxu1 %vm227_vm3, %v405_v39  ;;  %334 = vmatpush.msk.msrb.mxu0 %vm226_vm4, %v405_v39 }
  0x2c   :  { %340 = vmatpush.msk.msrb.mxu1 %vm225_vm5, %v405_v39  ;;  %335 = vmatpush.msk.msrb.mxu0 %vm224_vm6, %v405_v39 }
  0x2e   :  { %341 = vmatpush.msk.msrb.mxu1 %vm223_vm7, %v405_v39  ;;  %336 = vmatpush.msk.msrb.mxu0 %vm222_vm8, %v405_v39 }
  0xa4   :  { %v129_v11 = vpop.f32.mrf.mxu0  ;;  %v149_v34 = vpop.f32.mrf.mxu1 }
  0xa5   :  { %v150_v17 = vadd.f32 %v149_v34, %v129_v11 }
  0xa9   :  { %v169_v37 = vpop.f32.mrf.mxu2  ;;  %v189_v38 = vpop.f32.mrf.mxu3 }
  0xaa   :  { %v170_v40 = vadd.f32 %v169_v37, %v150_v17 }
  0xac   :  { %v190_v2 = vadd.f32 %v189_v38, %v170_v40 }
  0xae   :  { %v192_v3 = vsub.f32 0.0, %v190_v2 }
  0xb0   :  { %v193_v41 = vmul.f32 1.442695, %v192_v3 }
  0xb2   :  { %347 = vpow2.f32 %v193_v41 }
  0xb8   :  { %v348_v42 = vpop.eup %347 }
  0xb9   :  { %v195_v4 = vadd.f32 1.0, %v348_v42 }
  0xbb   :  { %349 = vrcp.f32 %v195_v4  ;;  %v207_v46 = vand.u32 2147483648, %v195_v4  ;;  %v205_v48 = vand.u32 2147483647, %v195_v4  ;;  %vm201_vm10 = vweird.f32 %v195_v4 }
  0xbd   :  { %v208_v1 = vor.u32 1.1754944e-38, %v207_v46  ;;  %vm206_vm12 = vcmp.eq.f32.partialorder %v205_v48, 8.507059e+37 }
  0xc1   :  { %v350_v43 = vpop.eup %349 }
  0xc2   :  { %v197_v44 = vmul.f32 %v350_v43, %v195_v4  ;;  %vm202_vm9 = vweird.f32 %v350_v43 }
  0xc3   :  { %vm203_vm11 = vmor %vm201_vm10, %vm202_vm9 }
  0xc4   :  { %v198_v45 = vsub.f32 1.0, %v197_v44 }
  0xc6   :  { %v199_v47 = vmul.f32 %v350_v43, %v198_v45 }
  0xc8   :  { %v200_v49 = vadd.f32 %v350_v43, %v199_v47 }
  0xca   :  { %v204_v50 = vsel %vm203_vm11, %v350_v43, %v200_v49 }
  0xcb   :  { %v209_v51 = vsel %vm206_vm12, %v208_v1, %v204_v50 }
  0xcc   :  { %v210_v52 = vmul.f32 16.0, %v209_v51 }
  0xce   :  { %337 = vmatmul.msk.f32.vlgmr.msrb.gmra.mxu0 %vm246_vm13, %v210_v52  ;;  %342 = vmatmul.msk.f32.vlgmr.msrb.gmra.mxu1 %vm246_vm13, %v210_v52 }
 0x14b   :  { %v294_v53 = vpop.f32.mrf.mxu1  ;;  %v274_v55 = vpop.f32.mrf.mxu0 }
 0x14c   :  { %v299_v54 = vrot.slane %v294_v53, 4 }
 0x14e   :  { %v301_v56 = vsel %vm300_vm14, %v274_v55, %v299_v54 }
 0x14f   :  { %303 = vst [vmem:[#allocation5] sm:$0xff] %v301_v56 }
 0x150   :  { %314 = dma.vmem_to_hbm [thread:$0]  %s310_s11, 128, %s312_s14, [#allocation4]  }
 0x151   :  { %401 = dma.done.wait [#allocation4], 128  }
 0x152   :  { %402 = vsyncadd [#allocation4], 4294967168 }
 0x153   :  { %319 = vsyncpa [#allocation3], 1 }
 0x154   :  { %320 = vsyncpa [#allocation4], 1 }

</bundles_post_ra>
